<compile_context>
chip_gen: v7x
topology: tpu7x:2x2x1
jax: 0.10.0
libtpu: 0.0.40
codegen_flags: <defaults>
</compile_context>

<pallas_src>
import functools

import jax
import jax.numpy as jnp
import numpy as np
from jax.experimental import pallas as pl
from jax.experimental.pallas import tpu as pltpu

_MIB = 1024 * 1024


def _round_up(x, m):
    return ((x + m - 1) // m) * m


def _sublane_multiple(dtype):
    # sublane packing: 8 rows for 32-bit, 16 for bf16/fp16, 32 for 8-bit types
    return max(8, 32 // np.dtype(dtype).itemsize)


@functools.lru_cache(maxsize=None)
def _vmem_cap_bytes():
    try:
        cap = int(pltpu.get_tpu_info().vmem_capacity_bytes)
        if cap > 0:
            return cap
    except Exception:
        pass
    return 64 * _MIB


@functools.lru_cache(maxsize=None)
def _pipeline_mode_supported():
    """One-time, cached probe (off the steady-state hot path): does this
    jax/libtpu accept pl.BlockSpec(..., pipeline_mode=pl.Buffered(n)) end to
    end?  Replaces the previous per-call try/except + host sync."""
    try:
        def _probe_kernel(a_ref, b_ref, o_ref):
            o_ref[...] = a_ref[...] + b_ref[...]

        fn = pl.pallas_call(
            _probe_kernel,
            out_shape=jax.ShapeDtypeStruct((32, 128), jnp.float32),
            grid_spec=pltpu.PrefetchScalarGridSpec(
                num_scalar_prefetch=0,
                grid=(4,),
                in_specs=[pl.BlockSpec((8, 128), lambda i: (i, 0),
                                       pipeline_mode=pl.Buffered(3)),
                          pl.BlockSpec((8, 128), lambda i: (0, 0),
                                       pipeline_mode=pl.Buffered(1))],
                out_specs=pl.BlockSpec((8, 128), lambda i: (i, 0))),
        )
        jax.block_until_ready(fn(jnp.zeros((32, 128), jnp.float32),
                                 jnp.zeros((8, 128), jnp.float32)))
        return True
    except Exception:
        return False


def _pm_kwargs(n, enabled):
    return dict(pipeline_mode=pl.Buffered(n)) if enabled else {}


# ----------------------------- Pallas kernel --------------------------------
def _pyramid_kv_kernel(has_importance, k_ref, v_ref, *refs):
    """out = x + ((x @ W1 + b1) @ W2 + b2), applied to one key tile and one
    value tile per grid step with the SAME VMEM-resident weights.

    The K and V tiles are concatenated into a single (2*rb, Hp) LHS so the
    weights go through the MXU once per grid step.  Accumulation and the
    residual add are f32 regardless of the parameter / activation dtype.
    """
    if has_importance:
        imp_ref, w1_ref, b1_ref, w2_ref, b2_ref, ok_ref, ov_ref = refs
    else:
        w1_ref, b1_ref, w2_ref, b2_ref, ok_ref, ov_ref = refs
        imp_ref = None

    rb = ok_ref.shape[0]
    w1 = w1_ref[...]                              # (Hp, Cp)
    w2 = w2_ref[...]                              # (Cp, Hp)
    b1 = b1_ref[...].astype(jnp.float32)          # (1, Cp) broadcast in-kernel
    b2 = b2_ref[...].astype(jnp.float32)          # (1, Hp)

    x = jnp.concatenate([k_ref[...], v_ref[...]], axis=0).astype(jnp.float32)
    if has_importance:
        imp = imp_ref[...].astype(jnp.float32)            # (rb, 1)
        x = x * jnp.concatenate([imp, imp], axis=0)       # (2rb, Hp) * (2rb, 1)

    comp = jnp.dot(x.astype(w1.dtype), w1,
                   preferred_element_type=jnp.float32) + b1
    dec = jnp.dot(comp.astype(w2.dtype), w2,
                  preferred_element_type=jnp.float32) + b2
    out = x + dec                                          # f32 residual add
    ok_ref[...] = out[:rb].astype(ok_ref.dtype)
    ov_ref[...] = out[rb:].astype(ov_ref.dtype)


# ------------------------------ jitted wrapper -------------------------------
@functools.partial(jax.jit, static_argnames=("row_block", "use_pipeline_mode"))
def _pyramid_compress_kv_impl(keys, values, w1_t_pad, b1_pad, w2_t_pad, b2_pad,
                              importance=None, row_block=None,
                              use_pipeline_mode=False):
    B, S, H = keys.shape
    Hp, Cp = w1_t_pad.shape
    assert Hp >= H and w2_t_pad.shape == (Cp, Hp)

    N = B * S
    xdt = keys.dtype
    xb = np.dtype(xdt).itemsize
    pb = np.dtype(w1_t_pad.dtype).itemsize
    sub = _sublane_multiple(xdt)

    k2 = keys.reshape(N, H)
    v2 = values.reshape(N, H)
    col_pad = Hp - H
    if col_pad:
        # Only taken when H % 128 != 0 (tiny / unusual hidden sizes).  The
        # common lane-aligned case skips this extra HBM pass entirely, and the
        # row axis is never padded (Pallas bounds the ragged last tile).
        k2 = jnp.pad(k2, ((0, 0), (0, col_pad)))
        v2 = jnp.pad(v2, ((0, 0), (0, col_pad)))

    has_importance = importance is not None
    inputs = [k2, v2]
    if has_importance:
        inputs.append(importance.reshape(N, 1).astype(jnp.float32))
    inputs += [w1_t_pad, b1_pad, w2_t_pad, b2_pad]

    # ---- row tile: ~2 MiB per input tile, sublane-packed for the KV dtype,
    # re-split into >= 2..8 evenly sized grid steps so both v7x TCs stay busy.
    if row_block is None:
        rb = max(sub, (2 * _MIB) // max(1, Hp * xb))
        rb = _round_up(min(rb, 4096), sub)
        if pl.cdiv(N, rb) < 8:
            desired = min(8, max(2, pl.cdiv(N, sub)))
            rb = max(sub, _round_up(pl.cdiv(N, desired), sub))
        row_block = rb
    row_block = min(_round_up(row_block, sub), _round_up(N, sub))
    grid = (pl.cdiv(N, row_block),)

    # deeper input pipelining in the mem-bound (small Hp) regime
    x_in_kw = _pm_kwargs(3, use_pipeline_mode and Hp <= 512)
    w_kw = _pm_kwargs(1, use_pipeline_mode)       # constant index_map -> 1 buffer

    x_in_spec = pl.BlockSpec((row_block, Hp), lambda i: (i, 0), **x_in_kw)
    x_out_spec = pl.BlockSpec((row_block, Hp), lambda i: (i, 0))
    imp_spec = pl.BlockSpec((row_block, 1), lambda i: (i, 0), **x_in_kw)
    w_specs = [
        pl.BlockSpec((Hp, Cp), lambda i: (0, 0), **w_kw),
        pl.BlockSpec((1, Cp), lambda i: (0, 0), **w_kw),
        pl.BlockSpec((Cp, Hp), lambda i: (0, 0), **w_kw),
        pl.BlockSpec((1, Hp), lambda i: (0, 0), **w_kw),
    ]
    in_specs = ([x_in_spec, x_in_spec]
                + ([imp_spec] if has_importance else [])
                + w_specs)

    # ---- generation-aware VMEM budget: query physical VMEM, leave headroom.
    n_x_buf = 3 if (use_pipeline_mode and Hp <= 512) else 2
    n_w_buf = 1 if use_pipeline_mode else 2
    w_bytes = (2 * Hp * Cp + Cp + Hp) * pb
    x_bytes = (2 * n_x_buf + 2 * 2) * row_block * Hp * xb   # k/v in + k/v out
    imp_bytes = (n_x_buf * row_block * 128 * 4) if has_importance else 0
    scratch_bytes = 2 * row_block * (3 * Hp + Cp) * 4       # f32 x/comp/dec/out
    budget = x_bytes + n_w_buf * w_bytes + imp_bytes + scratch_bytes
    cap = _vmem_cap_bytes()
    vmem_limit = int(min(max(budget + budget // 4, 16 * _MIB), cap - cap // 4))
    # TODO(synk): for hidden sizes where 2*Hp*Cp*itemsize approaches the
    # per-core VMEM budget (e.g. H>=8192 bf16 on v7x), add a Cp reduction grid
    # axis streaming W1 column-blocks / W2 row-blocks into an f32 accumulator
    # instead of keeping the full weights resident.

    flops = 8 * N * Hp * Cp                       # K & V, two matmuls, 2 flop/MAC
    bytes_accessed = 4 * N * Hp * xb + w_bytes + (N * 4 if has_importance else 0)
    cost = pl.CostEstimate(flops=flops, transcendentals=0,
                           bytes_accessed=bytes_accessed)

    ok, ov = pl.pallas_call(
        functools.partial(_pyramid_kv_kernel, has_importance),
        out_shape=(jax.ShapeDtypeStruct((N, Hp), keys.dtype),
                   jax.ShapeDtypeStruct((N, Hp), values.dtype)),
        grid_spec=pltpu.PrefetchScalarGridSpec(
            num_scalar_prefetch=0,
            grid=grid,
            in_specs=in_specs,
            out_specs=[x_out_spec, x_out_spec]),
        compiler_params=pltpu.CompilerParams(
            dimension_semantics=("parallel",),
            vmem_limit_bytes=vmem_limit),
        cost_estimate=cost,
    )(*inputs)

    if col_pad:
        ok = ok[:, :H]
        ov = ov[:, :H]
    return ok.reshape(B, S, H), ov.reshape(B, S, H)


def pyramid_compress_kv(keys, values, w1_t_pad, b1_pad, w2_t_pad, b2_pad,
                        importance=None, row_block=None):
    """Apply pyramid compression to keys and values ([B,S,H]) in one call."""
    _vmem_cap_bytes()                    # cached hardware queries, done eagerly
    use_pm = _pipeline_mode_supported()  # one-time probe (cached), not per call
    return _pyramid_compress_kv_impl(
        keys, values, w1_t_pad, b1_pad, w2_t_pad, b2_pad,
        importance=importance, row_block=row_block, use_pipeline_mode=use_pm)


# ------------------------------ module wrapper -------------------------------
class KVCacheCompressorPallas:
    """KVCacheCompressor(compression_type='pyramid') with a fused Pallas kernel.

    Parameters default to bfloat16 (bf16-native MXUs on v5e/v6e/v7x, half the
    weight DMA/VMEM); the matmuls still accumulate in f32 and the residual add
    is f32, so results deviate from the f32 PyTorch reference only by bf16
    weight/activation rounding.  Pass param_dtype=jnp.float32 to match the
    f32 reference numerics.
    """
    # TODO(synk): compression_type='dynamic' (DynamicCompression) not implemented.

    def __init__(self, hidden_size, compression_type='pyramid',
                 compression_ratio=0.5, param_dtype=jnp.bfloat16, key=None):
        if compression_type != 'pyramid':
            raise ValueError(f"Unsupported compression type: {compression_type}")
        if key is None:
            key = jax.random.PRNGKey(0)
        self.hidden_size = hidden_size
        C = int(hidden_size * compression_ratio)
        self.compressed_size = C

        k1, k2, k3, k4 = jax.random.split(key, 4)
        # PyTorch nn.Linear default init: U(-1/sqrt(fan_in), 1/sqrt(fan_in))
        bound1 = 1.0 / np.sqrt(hidden_size)
        bound2 = 1.0 / np.sqrt(max(C, 1))
        # master copies in f32, stored transposed ([in, out]) so the kernel
        # computes x @ W directly on the MXU
        self.w1_t = jax.random.uniform(k1, (hidden_size, C), jnp.float32, -bound1, bound1)
        self.b1 = jax.random.uniform(k2, (C,), jnp.float32, -bound1, bound1)
        self.w2_t = jax.random.uniform(k3, (C, hidden_size), jnp.float32, -bound2, bound2)
        self.b2 = jax.random.uniform(k4, (hidden_size,), jnp.float32, -bound2, bound2)
        # importance_weights exists in the PyTorch module but is unused in
        # forward(); kept for shape parity only.
        self.importance_weights = jnp.ones((hidden_size,), jnp.float32)

        # lane-dense, zero-padded copies built ONCE here (free at runtime);
        # the hidden axis is only padded when H % 128 != 0 so the common case
        # needs no per-call activation padding at all.
        Hp = _round_up(hidden_size, 128)
        Cp = max(128, _round_up(C, 128))
        self._Hp, self._Cp = Hp, Cp
        self._w1_t_pad = jnp.zeros((Hp, Cp), param_dtype).at[:hidden_size, :C].set(
            self.w1_t.astype(param_dtype))
        self._b1_pad = jnp.zeros((1, Cp), param_dtype).at[0, :C].set(
            self.b1.astype(param_dtype))
        self._w2_t_pad = jnp.zeros((Cp, Hp), param_dtype).at[:C, :hidden_size].set(
            self.w2_t.astype(param_dtype))
        self._b2_pad = jnp.zeros((1, Hp), param_dtype).at[0, :hidden_size].set(
            self.b2.astype(param_dtype))

    def __call__(self, keys, values, importance=None, row_block=None):
        return pyramid_compress_kv(
            keys, values, self._w1_t_pad, self._b1_pad, self._w2_t_pad,
            self._b2_pad, importance=importance, row_block=row_block)


# --------------------------------- reference ---------------------------------
def _ref_pyramid(x, w1_t, b1, w2_t, b2, importance=None, param_dtype=jnp.float32):
    """Pure-JAX reference matching PyramidCompression.forward; optionally
    emulates the kernel's param_dtype rounding (with f32 accumulation)."""
    x = jnp.asarray(x, jnp.float32)
    if importance is not None:
        x = x * importance[..., None].astype(jnp.float32)

    def q(a):
        return a.astype(param_dtype).astype(jnp.float32)

    comp = q(x) @ q(w1_t) + q(b1)
    dec = q(comp) @ q(w2_t) + q(b2)
    return x + dec


if __name__ == "__main__":
    key = jax.random.PRNGKey(0)
    k_keys, k_vals, k_imp = jax.random.split(key, 3)

    # shapes implied by the module: [batch, seq, hidden] = [2, 8, 32]
    B, S, H = 2, 8, 32
    keys = jax.random.normal(k_keys, (B, S, H), jnp.float32)
    values = jax.random.normal(k_vals, (B, S, H), jnp.float32)
    importance = jax.random.uniform(k_imp, (B, S), jnp.float32, 0.5, 1.5)

    # 1) f32 params: exact check against the PyTorch-equivalent reference
    comp_f32 = KVCacheCompressorPallas(H, compression_ratio=0.5,
                                       param_dtype=jnp.float32,
                                       key=jax.random.PRNGKey(42))
    ck, cv = comp_f32(keys, values)
    ck_i, cv_i = comp_f32(keys, values, importance=importance)
    jax.block_until_ready((ck, cv, ck_i, cv_i))
    for got, x, imp in ((ck, keys, None), (cv, values, None),
                        (ck_i, keys, importance), (cv_i, values, importance)):
        ref = _ref_pyramid(x, comp_f32.w1_t, comp_f32.b1,
                           comp_f32.w2_t, comp_f32.b2, imp)
        np.testing.assert_allclose(np.asarray(got), np.asarray(ref),
                                   rtol=5e-5, atol=5e-5)

    # 2) default fast path (bf16 params, f32 accumulation / residual)
    comp_bf16 = KVCacheCompressorPallas(H, compression_ratio=0.5,
                                        key=jax.random.PRNGKey(42))
    bk, bv = comp_bf16(keys, values, importance=importance)
    jax.block_until_ready((bk, bv))
    for got, x in ((bk, keys), (bv, values)):
        ref = _ref_pyramid(x, comp_bf16.w1_t, comp_bf16.b1, comp_bf16.w2_t,
                           comp_bf16.b2, importance, param_dtype=jnp.bfloat16)
        np.testing.assert_allclose(np.asarray(got), np.asarray(ref),
                                   rtol=1e-2, atol=1e-2)

    # 3) lane-aligned hidden (H % 128 == 0 -> no activation padding at all)
    #    with a ragged row count (partial last row tile handled by Pallas)
    B2, S2, H2 = 2, 9, 128
    keys2 = jax.random.normal(jax.random.PRNGKey(7), (B2, S2, H2), jnp.float32)
    values2 = jax.random.normal(jax.random.PRNGKey(8), (B2, S2, H2), jnp.float32)
    comp2 = KVCacheCompressorPallas(H2, compression_ratio=0.5,
                                    param_dtype=jnp.float32,
                                    key=jax.random.PRNGKey(3))
    ck2, cv2 = comp2(keys2, values2)
    jax.block_until_ready((ck2, cv2))
    np.testing.assert_allclose(
        np.asarray(ck2),
        np.asarray(_ref_pyramid(keys2, comp2.w1_t, comp2.b1, comp2.w2_t, comp2.b2)),
        rtol=5e-5, atol=5e-5)
    np.testing.assert_allclose(
        np.asarray(cv2),
        np.asarray(_ref_pyramid(values2, comp2.w1_t, comp2.b1, comp2.w2_t, comp2.b2)),
        rtol=5e-5, atol=5e-5)

    print("KERNEL_OK")
</pallas_src>

<mosaic_0001>
module attributes {stable_mosaic.version = 11 : i64} {
  func.func @_pyramid_kv_kernel(%arg0: i32, %arg1: memref<8x128xf32, #tpu.memory_space<vmem>>, %arg2: memref<8x128xf32, #tpu.memory_space<vmem>>, %arg3: memref<128x128xf32, #tpu.memory_space<vmem>>, %arg4: memref<1x128xf32, #tpu.memory_space<vmem>>, %arg5: memref<128x128xf32, #tpu.memory_space<vmem>>, %arg6: memref<1x128xf32, #tpu.memory_space<vmem>>, %arg7: memref<8x128xf32, #tpu.memory_space<vmem>>, %arg8: memref<8x128xf32, #tpu.memory_space<vmem>>) attributes {dimension_semantics = [#tpu.dimension_semantics<parallel>], iteration_bounds = array<i64: 2>, scalar_prefetch = 0 : i64, scratch_operands = 0 : i64, tpu.core_type = #tpu.core_type<tc>, window_params = [{transform_indices = @transform_0, window_bounds = array<i64: 8, 128>}, {transform_indices = @transform_1, window_bounds = array<i64: 8, 128>}, {pipeline_mode = #tpu.pipeline_mode<synchronous>, transform_indices = @transform_2, window_bounds = array<i64: 128, 128>}, {pipeline_mode = #tpu.pipeline_mode<synchronous>, transform_indices = @transform_3, window_bounds = array<i64: 1, 128>}, {pipeline_mode = #tpu.pipeline_mode<synchronous>, transform_indices = @transform_4, window_bounds = array<i64: 128, 128>}, {pipeline_mode = #tpu.pipeline_mode<synchronous>, transform_indices = @transform_5, window_bounds = array<i64: 1, 128>}, {transform_indices = @transform_6, window_bounds = array<i64: 8, 128>}, {transform_indices = @transform_7, window_bounds = array<i64: 8, 128>}]} {
    %c0 = arith.constant 0 : index
    %c0_0 = arith.constant 0 : index
    %0 = vector.load %arg3[%c0, %c0_0] : memref<128x128xf32, #tpu.memory_space<vmem>>, vector<128x128xf32>
    %c0_1 = arith.constant 0 : index
    %c0_2 = arith.constant 0 : index
    %1 = vector.load %arg5[%c0_1, %c0_2] : memref<128x128xf32, #tpu.memory_space<vmem>>, vector<128x128xf32>
    %c0_3 = arith.constant 0 : index
    %c0_4 = arith.constant 0 : index
    %2 = vector.load %arg4[%c0_3, %c0_4] : memref<1x128xf32, #tpu.memory_space<vmem>>, vector<1x128xf32>
    %c0_5 = arith.constant 0 : index
    %c0_6 = arith.constant 0 : index
    %3 = vector.load %arg6[%c0_5, %c0_6] : memref<1x128xf32, #tpu.memory_space<vmem>>, vector<1x128xf32>
    %c0_7 = arith.constant 0 : index
    %c0_8 = arith.constant 0 : index
    %4 = vector.load %arg1[%c0_7, %c0_8] : memref<8x128xf32, #tpu.memory_space<vmem>>, vector<8x128xf32>
    %c0_9 = arith.constant 0 : index
    %c0_10 = arith.constant 0 : index
    %5 = vector.load %arg2[%c0_9, %c0_10] : memref<8x128xf32, #tpu.memory_space<vmem>>, vector<8x128xf32>
    %6 = tpu.concatenate %4, %5 in 0 : vector<8x128xf32>, vector<8x128xf32> -> vector<16x128xf32>
    %cst = arith.constant dense<0.000000e+00> : vector<16x128xf32>
    %7 = tpu.matmul %6, %0, %cst {dimension_numbers = #tpu.dot_dimension_numbers<[1], [0], [0], [1], [0, 0, 1, 1], [], []>} : vector<16x128xf32>, vector<128x128xf32>, vector<16x128xf32> -> vector<16x128xf32>
    %8 = vector.broadcast %2 : vector<1x128xf32> to vector<16x128xf32>
    %9 = arith.addf %7, %8 : vector<16x128xf32>
    %cst_11 = arith.constant dense<0.000000e+00> : vector<16x128xf32>
    %10 = tpu.matmul %9, %1, %cst_11 {dimension_numbers = #tpu.dot_dimension_numbers<[1], [0], [0], [1], [0, 0, 1, 1], [], []>} : vector<16x128xf32>, vector<128x128xf32>, vector<16x128xf32> -> vector<16x128xf32>
    %11 = vector.broadcast %3 : vector<1x128xf32> to vector<16x128xf32>
    %12 = arith.addf %10, %11 : vector<16x128xf32>
    %13 = arith.addf %6, %12 : vector<16x128xf32>
    %14 = vector.extract_strided_slice %13 {offsets = [0, 0], sizes = [8, 128], strides = [1, 1]} : vector<16x128xf32> to vector<8x128xf32>
    %c0_12 = arith.constant 0 : index
    %c0_13 = arith.constant 0 : index
    %15 = vector.load %arg7[%c0_12, %c0_13] : memref<8x128xf32, #tpu.memory_space<vmem>>, vector<8x128xf32>
    tpu.vector_store %arg7[%c0_12, %c0_13], %14 {strides = array<i32>} : memref<8x128xf32, #tpu.memory_space<vmem>>, vector<8x128xf32>,
    %16 = vector.extract_strided_slice %13 {offsets = [8, 0], sizes = [8, 128], strides = [1, 1]} : vector<16x128xf32> to vector<8x128xf32>
    %c0_14 = arith.constant 0 : index
    %c0_15 = arith.constant 0 : index
    %17 = vector.load %arg8[%c0_14, %c0_15] : memref<8x128xf32, #tpu.memory_space<vmem>>, vector<8x128xf32>
    tpu.vector_store %arg8[%c0_14, %c0_15], %16 {strides = array<i32>} : memref<8x128xf32, #tpu.memory_space<vmem>>, vector<8x128xf32>,
    return
  }
  func.func @transform_0(%arg0: i32) -> (i32, i32) {
    %c0_i32 = arith.constant 0 : i32
    %c0_i32_0 = arith.constant 0 : i32
    return %arg0, %c0_i32 : i32, i32
  }
  func.func @transform_1(%arg0: i32) -> (i32, i32) {
    %c0_i32 = arith.constant 0 : i32
    %c0_i32_0 = arith.constant 0 : i32
    return %arg0, %c0_i32 : i32, i32
  }
  func.func @transform_2(%arg0: i32) -> (i32, i32) {
    %c0_i32 = arith.constant 0 : i32
    %c0_i32_0 = arith.constant 0 : i32
    %c0_i32_1 = arith.constant 0 : i32
    return %c0_i32, %c0_i32_0 : i32, i32
  }
  func.func @transform_3(%arg0: i32) -> (i32, i32) {
    %c0_i32 = arith.constant 0 : i32
    %c0_i32_0 = arith.constant 0 : i32
    %c0_i32_1 = arith.constant 0 : i32
    return %c0_i32, %c0_i32_0 : i32, i32
  }
  func.func @transform_4(%arg0: i32) -> (i32, i32) {
    %c0_i32 = arith.constant 0 : i32
    %c0_i32_0 = arith.constant 0 : i32
    %c0_i32_1 = arith.constant 0 : i32
    return %c0_i32, %c0_i32_0 : i32, i32
  }
  func.func @transform_5(%arg0: i32) -> (i32, i32) {
    %c0_i32 = arith.constant 0 : i32
    %c0_i32_0 = arith.constant 0 : i32
    %c0_i32_1 = arith.constant 0 : i32
    return %c0_i32, %c0_i32_0 : i32, i32
  }
  func.func @transform_6(%arg0: i32) -> (i32, i32) {
    %c0_i32 = arith.constant 0 : i32
    %c0_i32_0 = arith.constant 0 : i32
    return %arg0, %c0_i32 : i32, i32
  }
  func.func @transform_7(%arg0: i32) -> (i32, i32) {
    %c0_i32 = arith.constant 0 : i32
    %c0_i32_0 = arith.constant 0 : i32
    return %arg0, %c0_i32 : i32, i32
  }
}

</mosaic_0001>

<bundles_post_ra>
// kernel: _pyramid_compress_kv_impl.1
= control target key start
LH: loop header
LB: loop body
LE: loop exit
PB: predicated region body
PF: predicated region fallthrough
CT: control target
= control target key end

     0   :  { %13 = vsyncpa [#allocation3], 0  ;;  %s1101_s0 = inlined_call_operand.vmem [shape: f32[16,128], index: 0, kind: input, shape index: {}]   ;;  %s1102_s1 = inlined_call_operand.vmem [shape: f32[16,128], index: 1, kind: input, shape index: {}]   ;;  %s1103_s2 = inlined_call_operand.hbm [shape: f32[128,128], index: 2, kind: input, shape index: {}]   ;;  %s1104_s3 = inlined_call_operand.vmem [shape: f32[1,128], index: 3, kind: input, shape index: {}]   ;;  %s1105_s4 = inlined_call_operand.hbm [shape: f32[128,128], index: 4, kind: input, shape index: {}]   ;;  %s1106_s5 = inlined_call_operand.vmem [shape: f32[1,128], index: 5, kind: input, shape index: {}]   ;;  %s1107_s6 = inlined_call_operand.vmem [shape: f32[16,128], index: 6, kind: output, shape index: {0}]   ;;  %s1108_s7 = inlined_call_operand.vmem [shape: f32[16,128], index: 7, kind: output, shape index: {1}]  }
   0x1   :  { %14 = vsyncpa [#allocation5], 0  ;;  %s986_s24 = smov 0  }
   0x2 LB: > { %s992_s25 = sadd.s32 4294967295, %s940_s24   ;;  %p654_p0 = scmp.ge.s32.totalorder %s940_s24, 1  ;;  %s940_s24 = sphi %s986_s24, %s20_s24  }
   0x3   : > { %p213_p1 = scmp.lt.s32.totalorder %s940_s24, 3  ;;  %s942_s26 = smov [#allocation2]  }
   0x4   : > { %s225_s27 = sshll.u32 %s942_s26, 4  ;;  %p1109_p3 = scmp.eq.s32.totalorder %s992_s25, 0  ;;  %s226_s27 = int_to_ptr.vmem [resolvable:$true] %s225_s27 }
   0x5   : > { %p996_p2 = pnand %p654_p0, %p213_p1  ;;  %s943_s29 = smov [#allocation4]  }
   0x6   : > { %s241_s30 = sshll.u32 %s943_s29, 4  ;;  %s870_s11 = scalar_lea.hbm %s1103_s2, 2048  ;;  %s1009_s30 = int_to_ptr.vmem [resolvable:$true] %s241_s30 }
   0x7   : > { %s1111_s28 = scalar_select %p996_p2, 1, 0 }
   0x8   : > { %p847_p4 = pneg %p996_p2  ;;  %p871_p6 = scmp.ne.s32.totalorder %s1103_s2, %s870_s11 }
   0x9   : > { %p877_p10 = scmp.lt.u32.totalorder %s870_s11, %s1103_s2 }
   0xa   : > { %p1005_p5 = pnand %p1109_p3, %p847_p4 }
   0xc   : > { %p872_p7 = pneg %p1005_p5 }
   0xe   : > { %p873_p8 = pnand %p872_p7, %p871_p6 }
  0x10   : > { %p874_p9 = pneg %p873_p8 }
  0x12   : > { %p879_p11 = pnand %p877_p10, %p874_p9 }
  0x14   : > { %882 = shalt.err (!%p879_p11)
}
  0x15   : > { %s883_s16 = scalar_lea.vmem %s226_s27, 2048  ;;  %p891_p1 = scmp.lt.s32.totalorder %s226_s27, %s226_s27 }
  0x16   : > { %p884_p12 = scmp.ne.s32.totalorder %s226_s27, %s883_s16  ;;  %p892_p4 = scmp.lt.s32.totalorder %s883_s16, %s883_s16 }
  0x18   : > { %p886_p13 = pnand %p884_p12, %p872_p7  ;;  %p893_p3 = por %p892_p4, %p891_p1 }
  0x1a   : > { %p887_p0 = pneg %p886_p13 }
  0x1c   : > { %p894_p2 = pnand %p893_p3, %p887_p0 }
  0x1e   : > { %897 = shalt.err (!%p894_p2)
}
  0x1f   : > { %s944_s17 = smov 128   ;;  %s945_s18 = smov 8  }
  0x20   : > { %850 = dma.hbm_to_vmem [thread:$0]  (!%p1005_p5), %s1103_s2, 2048, %s226_s27, [#allocation3], %s944_s17, %s944_s17, %s945_s18  }
  0x21   : > { %s898_s23 = scalar_lea.hbm %s1105_s4, 2048 }
  0x22   : > { %p899_p6 = scmp.ne.s32.totalorder %s1105_s4, %s898_s23  ;;  %p905_p8 = scmp.lt.u32.totalorder %s898_s23, %s1105_s4 }
  0x24   : > { %p901_p2 = pnand %p899_p6, %p872_p7 }
  0x26   : > { %p902_p3 = pneg %p901_p2 }
  0x28   : > { %p907_p9 = pnand %p905_p8, %p902_p3 }
  0x2a   : > { %910 = shalt.err (!%p907_p9)
}
  0x2b   : > { %s911_s27 = scalar_lea.vmem %s1009_s30, 2048  ;;  %p919_p13 = scmp.lt.s32.totalorder %s1009_s30, %s1009_s30 }
  0x2c   : > { %p912_p10 = scmp.ne.s32.totalorder %s1009_s30, %s911_s27  ;;  %p920_p0 = scmp.lt.s32.totalorder %s911_s27, %s911_s27 }
  0x2e   : > { %p914_p11 = pnand %p912_p10, %p872_p7  ;;  %p921_p1 = por %p920_p0, %p919_p13 }
  0x30   : > { %p915_p12 = pneg %p914_p11 }
  0x32   : > { %p922_p4 = pnand %p921_p1, %p915_p12 }
  0x34   : > { %925 = shalt.err (!%p922_p4)
}
  0x35   : > { %853 = dma.hbm_to_vmem [thread:$0]  (!%p1005_p5), %s1105_s4, 2048, %s1009_s30, [#allocation5], %s944_s17, %s944_s17, %s945_s18  }
  0x36   : > { %p1113_p6 = scmp.ne.s32.totalorder %s1111_s28, 0 }
  0x37   : > { %p1114_p2 = scmp.eq.s32.totalorder (!%p1113_p6), %s992_s25, 0 }
  0x38   : > { %274 = sbr.rel (%p1113_p6) target bundleno = 536 (0x218), region = 44 }
  0x3f   : > { %931 = dma.done.wait (%p1114_p2), [#allocation3], 2048   ;;  %p1115_p7 = pmov %p1114_p2 }
  0x40   : > { %p1116_p3 = pmov %p1114_p2 }
  0x41   : > { %933 = vsyncadd (%p1115_p7), [#allocation3], 4294965248 }
  0x42   : > { %935 = dma.done.wait (%p1116_p3), [#allocation5], 2048   ;;  %p1117_p8 = pmov %p1114_p2 }
  0x43   : > { %p316_p9 = scmp.lt.s32.totalorder %s992_s25, 1  ;;  %v332_v0 = vld [vmem:[#allocation2] sm:$0xff]  ;;  %v333_v1 = vld [vmem:[#allocation2 + $0x8] sm:$0xff]  ;;  %v334_v2 = vld [vmem:[#allocation2 + $0x10] sm:$0xff] }
  0x44   : > { %937 = vsyncadd (%p1117_p8), [#allocation5], 4294965248  ;;  %v775_v3 = vpack.c.bf16 %v333_v1, %v332_v0  ;;  %v335_v4 = vld [vmem:[#allocation2 + $0x18] sm:$0xff]  ;;  %v336_v6 = vld [vmem:[#allocation2 + $0x20] sm:$0xff] }
  0x45   : > { %s1119_s25 = smov (!%p316_p9, %s992_s25), 1  ;;  %v779_v5 = vpack.c.bf16 %v335_v4, %v334_v2  ;;  %v337_v7 = vld [vmem:[#allocation2 + $0x28] sm:$0xff]  ;;  %v338_v9 = vld [vmem:[#allocation2 + $0x30] sm:$0xff]  ;;  %v339_v10 = vld [vmem:[#allocation2 + $0x38] sm:$0xff] }
  0x46   : > { %s1070_s30 = sshll.u32 %s1119_s25, 3  ;;  %776 = vmatprep.subr.bf16.mxu0 %v775_v3  ;;  %v783_v8 = vpack.c.bf16 %v337_v7, %v336_v6  ;;  %v348_v12 = vld [vmem:[#allocation4] sm:$0xff]  ;;  %v349_v13 = vld [vmem:[#allocation4 + $0x8] sm:$0xff]  ;;  %v350_v14 = vld [vmem:[#allocation4 + $0x10] sm:$0xff]  ;;  %v787_v20 = vpack.c.bf16 %v339_v10, %v338_v9 }
  0x47   : > { %s319_s13 = scalar_lea.vmem %s1101_s0, %s1070_s30  ;;  %778 = vmatpush3.bf16.msra.mxu0 %v775_v3  ;;  %v807_v15 = vpack.c.bf16 %v349_v13, %v348_v12  ;;  %v351_v16 = vld [vmem:[#allocation4 + $0x18] sm:$0xff]  ;;  %v352_v18 = vld [vmem:[#allocation4 + $0x20] sm:$0xff]  ;;  %v353_v19 = vld [vmem:[#allocation4 + $0x28] sm:$0xff]  ;;  %s323_s15 = scalar_lea.vmem %s1102_s1, %s1070_s30 }
  0x48   : > { %780 = vmatprep.subr.bf16.mxu0 %v779_v5  ;;  %v1076_v11 = vld [vmem:[%s319_s13] sm:$0xff]  ;;  %v811_v17 = vpack.c.bf16 %v351_v16, %v350_v14  ;;  %v341_v22 = vld [vmem:[#allocation2 + $0x48] sm:$0xff]  ;;  %v815_v23 = vpack.c.bf16 %v353_v19, %v352_v18  ;;  %v354_v24 = vld [vmem:[#allocation4 + $0x30] sm:$0xff]  ;;  %s331_s22 = scalar_lea.vmem %s1108_s7, %s1070_s30  ;;  %s327_s29 = scalar_lea.vmem %s1107_s6, %s1070_s30 }
  0x49   : > { %737 = vmatprep.mubr.f32.mxu0 %v1076_v11  ;;  %808 = vmatprep.subr.bf16.mxu1 %v807_v15  ;;  %v340_v21 = vld [vmem:[#allocation2 + $0x40] sm:$0xff]  ;;  %v355_v25 = vld [vmem:[#allocation4 + $0x38] sm:$0xff]  ;;  %v342_v27 = vld [vmem:[#allocation2 + $0x50] sm:$0xff] }
  0x4a   : > { %810 = vmatpush3.bf16.msra.mxu1 %v807_v15  ;;  %v791_v26 = vpack.c.bf16 %v341_v22, %v340_v21  ;;  %v343_v28 = vld [vmem:[#allocation2 + $0x58] sm:$0xff]  ;;  %v819_v29 = vpack.c.bf16 %v355_v25, %v354_v24  ;;  %v356_v30 = vld [vmem:[#allocation4 + $0x40] sm:$0xff]  ;;  %v357_v31 = vld [vmem:[#allocation4 + $0x48] sm:$0xff] }
  0x4b   : > { %782 = vmatpush3.bf16.msra.mxu0 %v779_v5  ;;  %812 = vmatprep.subr.bf16.mxu1 %v811_v17  ;;  %v795_v32 = vpack.c.bf16 %v343_v28, %v342_v27  ;;  %v344_v33 = vld [vmem:[#allocation2 + $0x60] sm:$0xff]  ;;  %v345_v34 = vld [vmem:[#allocation2 + $0x68] sm:$0xff]  ;;  %v823_v35 = vpack.c.bf16 %v357_v31, %v356_v30  ;;  %v358_v36 = vld [vmem:[#allocation4 + $0x50] sm:$0xff] }
  0x4c   : > { %784 = vmatprep.subr.bf16.mxu0 %v783_v8  ;;  %v359_v37 = vld [vmem:[#allocation4 + $0x58] sm:$0xff]  ;;  %v799_v38 = vpack.c.bf16 %v345_v34, %v344_v33  ;;  %v346_v39 = vld [vmem:[#allocation2 + $0x70] sm:$0xff]  ;;  %v360_v42 = vld [vmem:[#allocation4 + $0x60] sm:$0xff] }
  0x4d   : > { %v347_v40 = vld [vmem:[#allocation2 + $0x78] sm:$0xff]  ;;  %v827_v41 = vpack.c.bf16 %v359_v37, %v358_v36  ;;  %v361_v43 = vld [vmem:[#allocation4 + $0x68] sm:$0xff]  ;;  %v367_v46 = vld [vmem:[%s323_s15] sm:$0xff] }
  0x4e   : > { %814 = vmatpush3.bf16.msra.mxu1 %v811_v17  ;;  %v803_v44 = vpack.c.bf16 %v347_v40, %v346_v39  ;;  %v831_v45 = vpack.c.bf16 %v361_v43, %v360_v42  ;;  %v362_v47 = vld [vmem:[#allocation4 + $0x70] sm:$0xff]  ;;  %v363_v48 = vld [vmem:[#allocation4 + $0x78] sm:$0xff]  ;;  %v665_v50 = vld [vmem:[%s1104_s3] ss:$0 sm:$0xff] }
  0x4f   : > { %786 = vmatpush3.bf16.msra.mxu0 %v783_v8  ;;  %816 = vmatprep.subr.bf16.mxu1 %v815_v23  ;;  %v835_v49 = vpack.c.bf16 %v363_v48, %v362_v47  ;;  %v666_v55 = vld [vmem:[%s1106_s5] ss:$0 sm:$0xff] }
  0x50   : > { %788 = vmatprep.subr.bf16.mxu0 %v787_v20 }
  0x52   : > { %818 = vmatpush3.bf16.msra.mxu1 %v815_v23 }
  0x53   : > { %790 = vmatpush3.bf16.msra.mxu0 %v787_v20  ;;  %820 = vmatprep.subr.bf16.mxu1 %v819_v29 }
  0x54   : > { %792 = vmatprep.subr.bf16.mxu0 %v791_v26 }
  0x56   : > { %822 = vmatpush3.bf16.msra.mxu1 %v819_v29 }
  0x57   : > { %794 = vmatpush3.bf16.msra.mxu0 %v791_v26  ;;  %824 = vmatprep.subr.bf16.mxu1 %v823_v35 }
  0x58   : > { %796 = vmatprep.subr.bf16.mxu0 %v795_v32 }
  0x5a   : > { %826 = vmatpush3.bf16.msra.mxu1 %v823_v35 }
  0x5b   : > { %798 = vmatpush3.bf16.msra.mxu0 %v795_v32  ;;  %828 = vmatprep.subr.bf16.mxu1 %v827_v41 }
  0x5c   : > { %800 = vmatprep.subr.bf16.mxu0 %v799_v38 }
  0x5e   : > { %830 = vmatpush3.bf16.msra.mxu1 %v827_v41 }
  0x5f   : > { %802 = vmatpush3.bf16.msra.mxu0 %v799_v38  ;;  %832 = vmatprep.subr.bf16.mxu1 %v831_v45 }
  0x60   : > { %804 = vmatprep.subr.bf16.mxu0 %v803_v44 }
  0x62   : > { %834 = vmatpush3.bf16.msra.mxu1 %v831_v45 }
  0x63   : > { %806 = vmatpush3.bf16.msra.mxu0 %v803_v44  ;;  %836 = vmatprep.subr.bf16.mxu1 %v835_v49 }
  0x66   : > { %738 = vmatmul.mubr.f32.vlgmr.msra.gmra.mrb[0].mxu0 %v367_v46  ;;  %838 = vmatpush3.bf16.msra.mxu1 %v835_v49 }
 0x139   : > { %v739_v51 = vpop.f32.mrb[0].mxu0 }
 0x13a   : > { %v440_v52 = vpop.f32.mrb[1].mxu0  ;;  %v446_v54 = vadd.f32 %v739_v51, %v665_v50 }
 0x13b   : > { %v441_v53 = vadd.f32 %v665_v50, %v440_v52 }
 0x13d   : > { %772 = vmatprep.mubr.f32.mxu1 %v441_v53 }
 0x13e   : > { %773 = vmatmul.mubr.f32.vlgmr.msra.gmra.mrb[0].mxu1 %v446_v54 }
 0x211   : > { %v774_v56 = vpop.f32.mrb[0].mxu1 }
 0x212   : > { %v527_v57 = vadd.f32 %v774_v56, %v666_v55  ;;  %v521_v58 = vpop.f32.mrb[1].mxu1 }
 0x213   : > { %v522_v59 = vadd.f32 %v666_v55, %v521_v58 }
 0x214   : > { %v531_v60 = vadd.f32 %v527_v57, %v367_v46 }
 0x215   : > { %v530_v61 = vadd.f32 %v522_v59, %v1076_v11 }
 0x216   : > { %533 = vst [vmem:[%s331_s22] sm:$0xff] %v531_v60 }
 0x217   : > { %532 = vst [vmem:[%s327_s29] sm:$0xff] %v530_v61 }
 0x218 PF: > { %s20_s24 = sadd.s32 1, %s940_s24  }
 0x219   : > { %p17_p5 = scmp.ge.s32.totalorder %s20_s24, 4  }
 0x21b   :  { %19 = sbr.rel (!%p17_p5) target bundleno = 2 (0x2), region = 98 }
 0x222   :  { %567 = vsyncpa [#allocation3], 1 }
 0x223   :  { %569 = vsyncpa [#allocation3 + $0x1], 1 }
 0x224   :  { %570 = vsyncpa [#allocation5], 1 }

</bundles_post_ra>
